<compile_context>
chip_gen: v7x
topology: tpu7x:2x2x1
jax: 0.10.0
libtpu: 0.0.40
codegen_flags: <defaults>
</compile_context>

<pallas_src>
import functools

import jax
import jax.numpy as jnp
from jax.experimental import pallas as pl
from jax.experimental.pallas import tpu as pltpu


def _bcl_partial_kernel(dist_ref, label_ref, acc_ref, *, margin, rows,
                        block_rows, slab_rows, steps_per_core):
    """Accumulate (8,128)-shaped partial sums of
       [pos_count, loss1_numerator, loss2_numerator]
       into the resident (24, 128) output block of this core."""
    c = pl.program_id(0)       # core split (CORE_PARALLEL when num_cores > 1)
    i = pl.program_id(1)       # reduction step (arbitrary)

    @pl.when(i == 0)
    def _init():
        acc_ref[...] = jnp.zeros_like(acc_ref)

    blk = c * steps_per_core + i
    n_slabs = block_rows // slab_rows

    def accumulate(masked):
        def slab_body(s, carry):
            off = pl.multiple_of(s * slab_rows, slab_rows)
            d = dist_ref[pl.ds(off, slab_rows), :].astype(jnp.float32)
            lab = label_ref[pl.ds(off, slab_rows), :].astype(jnp.float32)
            # label[label == 255] = 1  (after this the original's `mask` is
            # identically 1, so the mask multiplies are dropped -- exact).
            lab = jnp.where(lab == 255.0, 1.0, lab)
            # labels are now {-1, +1}: (1+lab)/2 is both the `label == 1`
            # indicator and the loss_1 weight; (1 - w_pos) is the loss_2 weight.
            w_pos = (lab + 1.0) * 0.5
            hinge = jnp.maximum(margin - d, 0.0)
            pos_c = w_pos
            t1 = w_pos * (d * d)
            t2 = (1.0 - w_pos) * (hinge * hinge)
            if masked:
                # Row-granularity validity -- runs only on the ragged tail tile
                # and on clamped duplicate tiles.  Selects (not multiplies) so
                # NaN/Inf garbage in the OOB-read region can never leak in.
                row = jax.lax.broadcasted_iota(jnp.int32, d.shape, 0)
                valid = (blk * block_rows + off + row) < rows
                pos_c = jnp.where(valid, pos_c, 0.0)
                t1 = jnp.where(valid, t1, 0.0)
                t2 = jnp.where(valid, t2, 0.0)

            def fold(x):
                # (slab, 128) -> (8, 128): pure VPU adds over full vregs,
                # no cross-lane (XLU) work in the hot loop.
                return jnp.sum(x.reshape(slab_rows // 8, 8, 128), axis=0)

            return carry + jnp.concatenate(
                [fold(pos_c), fold(t1), fold(t2)], axis=0)

        return jax.lax.fori_loop(0, n_slabs, slab_body,
                                 jnp.zeros((24, 128), jnp.float32))

    fully_valid = (blk + 1) * block_rows <= rows

    @pl.when(fully_valid)
    def _steady():
        # Mask-free steady-state path (interior tiles).
        acc_ref[...] += accumulate(False)

    @pl.when(jnp.logical_not(fully_valid))
    def _tail():
        # Ragged tail / clamped duplicate tiles only.
        acc_ref[...] += accumulate(True)


def _bcl_terms(d, lab, margin):
    """pos_count, loss1_num, loss2_num for a small jnp-handled chunk."""
    d = d.astype(jnp.float32)
    lab = lab.astype(jnp.float32)
    lab = jnp.where(lab == 255.0, 1.0, lab)
    w_pos = (lab + 1.0) * 0.5
    hinge = jnp.maximum(margin - d, 0.0)
    return (jnp.sum(w_pos),
            jnp.sum(w_pos * d * d),
            jnp.sum((1.0 - w_pos) * hinge * hinge))


def bcl_loss(distance, label, margin=2.0, block_rows=4096, slab_rows=512,
             num_cores=1):
    """Pallas implementation of BCL.forward(distance, label).

    Label values must be in {-1, 1, 255} (BCL contract).  On v7x pass
    num_cores=2 to shard the leading grid axis across both TensorCores
    (CORE_PARALLEL); leave at 1 on single-TensorCore v5e / v6e.
    """
    flat_d = distance.reshape(-1)
    flat_l = label.reshape(-1)
    n = flat_d.shape[0]
    assert n > 0

    block_rows = max(8, (int(block_rows) // 8) * 8)
    slab_rows = max(8, (int(slab_rows) // 8) * 8)

    rem = n % 128
    n128 = n - rem
    rows = n128 // 128

    pos_s = jnp.float32(0.0)
    t1_s = jnp.float32(0.0)
    t2_s = jnp.float32(0.0)

    tail_start = 0
    if rows >= 8:
        # Free reshape when n % 128 == 0 (common case).  When rem > 0 the
        # 128-aligned prefix may be materialized by XLA (rare; still no
        # jnp.pad of the full stream, and the <128-element remainder is folded
        # below with plain jnp).
        if rem:
            d2 = flat_d[:n128].reshape(rows, 128)
            l2 = flat_l[:n128].reshape(rows, 128)
        else:
            d2 = flat_d.reshape(rows, 128)
            l2 = flat_l.reshape(rows, 128)

        br = min(block_rows, (rows // 8) * 8)
        slab = min(slab_rows, br)
        br = (br // slab) * slab                     # br is a multiple of slab
        total_blocks = pl.cdiv(rows, br)
        num_cores = max(1, min(int(num_cores), total_blocks))
        steps = pl.cdiv(total_blocks, num_cores)

        def imap(c, i):
            # Clamp so a fully out-of-range block never issues an OOB DMA; the
            # duplicated block contributes nothing (row mask in-kernel).
            return (jnp.minimum(c * steps + i, total_blocks - 1), 0)

        kernel = functools.partial(
            _bcl_partial_kernel, margin=float(margin), rows=rows,
            block_rows=br, slab_rows=slab, steps_per_core=steps)

        lead_sem = pltpu.CORE_PARALLEL if num_cores > 1 else pltpu.ARBITRARY

        cost = pl.CostEstimate(
            flops=14 * rows * 128,
            transcendentals=0,
            bytes_accessed=rows * 128 * (4 + l2.dtype.itemsize)
            + num_cores * 24 * 128 * 4)

        partials = pl.pallas_call(
            kernel,
            out_shape=jax.ShapeDtypeStruct((num_cores, 24, 128), jnp.float32),
            grid_spec=pltpu.PrefetchScalarGridSpec(
                num_scalar_prefetch=0,
                grid=(num_cores, steps),
                in_specs=[
                    pl.BlockSpec((br, 128), imap),
                    pl.BlockSpec((br, 128), imap),
                ],
                out_specs=pl.BlockSpec((None, 24, 128),
                                       lambda c, i: (c, 0, 0)),
            ),
            compiler_params=pltpu.CompilerParams(
                dimension_semantics=(lead_sem, pltpu.ARBITRARY)),
            cost_estimate=cost,
        )(d2, l2)

        pos_s = pos_s + jnp.sum(partials[:, 0:8])
        t1_s = t1_s + jnp.sum(partials[:, 8:16])
        t2_s = t2_s + jnp.sum(partials[:, 16:24])
        tail_start = n128

    if tail_start < n:
        # Sub-128-element remainder (or whole tiny input): plain jnp.
        p, a, b = _bcl_terms(flat_d[tail_start:], flat_l[tail_start:], margin)
        pos_s = pos_s + p
        t1_s = t1_s + a
        t2_s = t2_s + b

    pos_num = pos_s + 0.0001
    # labels in {-1, 1} after the 255 -> 1 remap, so neg = n - pos.
    neg_num = (jnp.float32(n) - pos_s) + 0.0001
    return t1_s / pos_num + t2_s / neg_num


def _reference_bcl(distance, label, margin=2.0):
    """Pure-JAX reference mirroring the PyTorch BCL.forward exactly."""
    lab = jnp.where(label.astype(jnp.float32) == 255.0, 1.0,
                    label.astype(jnp.float32))
    mask = (lab != 255.0).astype(jnp.float32)
    d = distance.astype(jnp.float32) * mask
    pos_num = jnp.sum((lab == 1.0).astype(jnp.float32)) + 0.0001
    neg_num = jnp.sum((lab == -1.0).astype(jnp.float32)) + 0.0001
    loss_1 = jnp.sum((1.0 + lab) / 2.0 * d * d) / pos_num
    hinge = jnp.clip(margin - d, 0.0, None)
    loss_2 = jnp.sum((1.0 - lab) / 2.0 * mask * hinge * hinge) / neg_num
    return loss_1 + loss_2


if __name__ == "__main__":
    key = jax.random.PRNGKey(0)
    ks = jax.random.split(key, 10)

    def make_case(kd, kl, k255, shape, p_pos=0.5, p_ign=0.05):
        d = jax.random.uniform(kd, shape, jnp.float32, 0.0, 3.0)
        base = jnp.where(jax.random.bernoulli(kl, p_pos, shape), 1.0, -1.0)
        lab = jnp.where(jax.random.bernoulli(k255, p_ign, shape), 255.0, base)
        return d, lab.astype(jnp.float32)

    def check(name, out, ref):
        assert jnp.allclose(out, ref, rtol=1e-4, atol=1e-5), (name, out, ref)

    # 1) 1024-aligned input, single block, steady-state path only.
    d1, l1 = make_case(ks[0], ks[1], ks[2], (2, 1, 32, 32))
    out1 = jax.block_until_ready(bcl_loss(d1, l1))
    check("case1", out1, _reference_bcl(d1, l1))

    # 2) multi-block + multi-slab fori_loop + ragged (masked) tail tile.
    d2, l2 = make_case(ks[3], ks[4], ks[5], (2, 1, 96, 96),
                       p_pos=0.4, p_ign=0.03)
    out2 = jax.block_until_ready(bcl_loss(d2, l2, block_rows=96, slab_rows=24))
    check("case2", out2, _reference_bcl(d2, l2))

    # 3) bf16 label stream (upcast in-register in the kernel, no wrapper copy).
    out3 = jax.block_until_ready(
        bcl_loss(d2, l2.astype(jnp.bfloat16), block_rows=64))
    check("case3", out3, _reference_bcl(d2, l2))

    # 4) n % 128 != 0: kernel on the 128-aligned prefix + jnp remainder.
    d4, l4 = make_case(ks[6], ks[7], ks[8], (1, 1, 40, 40))
    out4 = jax.block_until_ready(bcl_loss(d4, l4))
    check("case4", out4, _reference_bcl(d4, l4))

    # 5) tiny input: pure-jnp fallback path (no kernel launch).
    d5, l5 = make_case(ks[8], ks[9], ks[0], (1, 1, 10, 10))
    out5 = jax.block_until_ready(bcl_loss(d5, l5))
    check("case5", out5, _reference_bcl(d5, l5))

    print("KERNEL_OK")
</pallas_src>

<mosaic_0001>
module attributes {stable_mosaic.version = 11 : i64} {
  func.func @_bcl_partial_kernel(%arg0: i32, %arg1: i32, %arg2: memref<16x128xf32, #tpu.memory_space<vmem>>, %arg3: memref<16x128xf32, #tpu.memory_space<vmem>>, %arg4: memref<1x24x128xf32, #tpu.memory_space<vmem>>) attributes {dimension_semantics = [#tpu.dimension_semantics<arbitrary>, #tpu.dimension_semantics<arbitrary>], iteration_bounds = array<i64: 1, 1>, scalar_prefetch = 0 : i64, scratch_operands = 0 : i64, tpu.core_type = #tpu.core_type<tc>, window_params = [{transform_indices = @transform_0, window_bounds = array<i64: 16, 128>}, {transform_indices = @transform_1, window_bounds = array<i64: 16, 128>}, {transform_indices = @transform_2, window_bounds = array<i64: 1, 24, 128>}]} {
    %c0_i32 = arith.constant 0 : i32
    %0 = arith.cmpi eq, %arg1, %c0_i32 : i32
    %1 = arith.extui %0 : i1 to i32
    %c0_i32_0 = arith.constant 0 : i32
    %2 = arith.cmpi ne, %1, %c0_i32_0 : i32
    scf.if %2 {
      %cst = arith.constant 0.000000e+00 : f32
      %13 = vector.broadcast %cst : f32 to vector<24x128xf32>
      %c0 = arith.constant 0 : index
      %c0_5 = arith.constant 0 : index
      %c0_6 = arith.constant 0 : index
      %14 = vector.load %arg4[%c0, %c0_5, %c0_6] : memref<1x24x128xf32, #tpu.memory_space<vmem>>, vector<1x24x128xf32>
      %15 = vector.shape_cast %14 : vector<1x24x128xf32> to vector<24x128xf32>
      %16 = vector.shape_cast %13 : vector<24x128xf32> to vector<1x24x128xf32>
      tpu.vector_store %arg4[%c0, %c0_5, %c0_6], %16 {strides = array<i32>} : memref<1x24x128xf32, #tpu.memory_space<vmem>>, vector<1x24x128xf32>,
    } else {
    }
    %c1_i32 = arith.constant 1 : i32
    %3 = arith.muli %arg0, %c1_i32 : i32
    %4 = arith.addi %3, %arg1 : i32
    %c1_i32_1 = arith.constant 1 : i32
    %5 = arith.addi %4, %c1_i32_1 : i32
    %c16_i32 = arith.constant 16 : i32
    %6 = arith.muli %5, %c16_i32 : i32
    %c16_i32_2 = arith.constant 16 : i32
    %7 = arith.cmpi sle, %6, %c16_i32_2 : i32
    %8 = arith.extui %7 : i1 to i32
    %c0_i32_3 = arith.constant 0 : i32
    %9 = arith.cmpi ne, %8, %c0_i32_3 : i32
    scf.if %9 {
      %c0 = arith.constant 0 : index
      %c0_5 = arith.constant 0 : index
      %c0_6 = arith.constant 0 : index
      %13 = vector.load %arg4[%c0, %c0_5, %c0_6] : memref<1x24x128xf32, #tpu.memory_space<vmem>>, vector<1x24x128xf32>
      %14 = vector.shape_cast %13 : vector<1x24x128xf32> to vector<24x128xf32>
      %cst = arith.constant 0.000000e+00 : f32
      %15 = vector.broadcast %cst : f32 to vector<24x128xf32>
      %c0_i32_7 = arith.constant 0 : i32
      %c16_i32_8 = arith.constant 16 : i32
      %16 = arith.muli %c0_i32_7, %c16_i32_8 : i32
      %17 = tpu.assume_multiple %16, 16 : i32
      %18 = arith.index_cast %17 : i32 to index
      %c0_9 = arith.constant 0 : index
      %19 = vector.load %arg2[%18, %c0_9] : memref<16x128xf32, #tpu.memory_space<vmem>>, vector<16x128xf32>
      %20 = arith.index_cast %17 : i32 to index
      %c0_10 = arith.constant 0 : index
      %21 = vector.load %arg3[%20, %c0_10] : memref<16x128xf32, #tpu.memory_space<vmem>>, vector<16x128xf32>
      %cst_11 = arith.constant 2.550000e+02 : f32
      %22 = vector.broadcast %cst_11 : f32 to vector<16x128xf32>
      %23 = arith.cmpf oeq, %21, %22 : vector<16x128xf32>
      %cst_12 = arith.constant 1.000000e+00 : f32
      %24 = vector.broadcast %cst_12 : f32 to vector<16x128xf32>
      %25 = arith.select %23, %24, %21 : vector<16x128xi1>, vector<16x128xf32>
      %cst_13 = arith.constant 1.000000e+00 : f32
      %26 = vector.broadcast %cst_13 : f32 to vector<16x128xf32>
      %27 = arith.addf %25, %26 : vector<16x128xf32>
      %cst_14 = arith.constant 5.000000e-01 : f32
      %28 = vector.broadcast %cst_14 : f32 to vector<16x128xf32>
      %29 = arith.mulf %27, %28 : vector<16x128xf32>
      %cst_15 = arith.constant 2.000000e+00 : f32
      %30 = vector.broadcast %cst_15 : f32 to vector<16x128xf32>
      %31 = arith.subf %30, %19 : vector<16x128xf32>
      %cst_16 = arith.constant 0.000000e+00 : f32
      %32 = vector.broadcast %cst_16 : f32 to vector<16x128xf32>
      %33 = arith.maximumf %31, %32 : vector<16x128xf32>
      %34 = arith.mulf %19, %19 : vector<16x128xf32>
      %35 = arith.mulf %29, %34 : vector<16x128xf32>
      %cst_17 = arith.constant 1.000000e+00 : f32
      %36 = vector.broadcast %cst_17 : f32 to vector<16x128xf32>
      %37 = arith.subf %36, %29 : vector<16x128xf32>
      %38 = arith.mulf %33, %33 : vector<16x128xf32>
      %39 = arith.mulf %37, %38 : vector<16x128xf32>
      %40 = vector.shape_cast %29 : vector<16x128xf32> to vector<2x8x128xf32>
      %cst_18 = arith.constant dense<0.000000e+00> : vector<8x128xf32>
      %41 = vector.multi_reduction <add>, %40, %cst_18 [0] : vector<2x8x128xf32> to vector<8x128xf32>
      %42 = vector.shape_cast %35 : vector<16x128xf32> to vector<2x8x128xf32>
      %cst_19 = arith.constant dense<0.000000e+00> : vector<8x128xf32>
      %43 = vector.multi_reduction <add>, %42, %cst_19 [0] : vector<2x8x128xf32> to vector<8x128xf32>
      %44 = vector.shape_cast %39 : vector<16x128xf32> to vector<2x8x128xf32>
      %cst_20 = arith.constant dense<0.000000e+00> : vector<8x128xf32>
      %45 = vector.multi_reduction <add>, %44, %cst_20 [0] : vector<2x8x128xf32> to vector<8x128xf32>
      %46 = tpu.concatenate %41, %43, %45 in 0 : vector<8x128xf32>, vector<8x128xf32>, vector<8x128xf32> -> vector<24x128xf32>
      %47 = arith.addf %15, %46 : vector<24x128xf32>
      %c1_i32_21 = arith.constant 1 : i32
      %48 = arith.addf %14, %47 : vector<24x128xf32>
      %c0_22 = arith.constant 0 : index
      %c0_23 = arith.constant 0 : index
      %c0_24 = arith.constant 0 : index
      %49 = vector.load %arg4[%c0_22, %c0_23, %c0_24] : memref<1x24x128xf32, #tpu.memory_space<vmem>>, vector<1x24x128xf32>
      %50 = vector.shape_cast %49 : vector<1x24x128xf32> to vector<24x128xf32>
      %51 = vector.shape_cast %48 : vector<24x128xf32> to vector<1x24x128xf32>
      tpu.vector_store %arg4[%c0_22, %c0_23, %c0_24], %51 {strides = array<i32>} : memref<1x24x128xf32, #tpu.memory_space<vmem>>, vector<1x24x128xf32>,
    } else {
    }
    %true = arith.constant true
    %10 = arith.xori %7, %true : i1
    %11 = arith.extui %10 : i1 to i32
    %c0_i32_4 = arith.constant 0 : i32
    %12 = arith.cmpi ne, %11, %c0_i32_4 : i32
    scf.if %12 {
      %c0 = arith.constant 0 : index
      %c0_5 = arith.constant 0 : index
      %c0_6 = arith.constant 0 : index
      %13 = vector.load %arg4[%c0, %c0_5, %c0_6] : memref<1x24x128xf32, #tpu.memory_space<vmem>>, vector<1x24x128xf32>
      %14 = vector.shape_cast %13 : vector<1x24x128xf32> to vector<24x128xf32>
      %cst = arith.constant 0.000000e+00 : f32
      %15 = vector.broadcast %cst : f32 to vector<24x128xf32>
      %c0_i32_7 = arith.constant 0 : i32
      %c16_i32_8 = arith.constant 16 : i32
      %16 = arith.muli %c0_i32_7, %c16_i32_8 : i32
      %17 = tpu.assume_multiple %16, 16 : i32
      %18 = arith.index_cast %17 : i32 to index
      %c0_9 = arith.constant 0 : index
      %19 = vector.load %arg2[%18, %c0_9] : memref<16x128xf32, #tpu.memory_space<vmem>>, vector<16x128xf32>
      %20 = arith.index_cast %17 : i32 to index
      %c0_10 = arith.constant 0 : index
      %21 = vector.load %arg3[%20, %c0_10] : memref<16x128xf32, #tpu.memory_space<vmem>>, vector<16x128xf32>
      %cst_11 = arith.constant 2.550000e+02 : f32
      %22 = vector.broadcast %cst_11 : f32 to vector<16x128xf32>
      %23 = arith.cmpf oeq, %21, %22 : vector<16x128xf32>
      %cst_12 = arith.constant 1.000000e+00 : f32
      %24 = vector.broadcast %cst_12 : f32 to vector<16x128xf32>
      %25 = arith.select %23, %24, %21 : vector<16x128xi1>, vector<16x128xf32>
      %cst_13 = arith.constant 1.000000e+00 : f32
      %26 = vector.broadcast %cst_13 : f32 to vector<16x128xf32>
      %27 = arith.addf %25, %26 : vector<16x128xf32>
      %cst_14 = arith.constant 5.000000e-01 : f32
      %28 = vector.broadcast %cst_14 : f32 to vector<16x128xf32>
      %29 = arith.mulf %27, %28 : vector<16x128xf32>
      %cst_15 = arith.constant 2.000000e+00 : f32
      %30 = vector.broadcast %cst_15 : f32 to vector<16x128xf32>
      %31 = arith.subf %30, %19 : vector<16x128xf32>
      %cst_16 = arith.constant 0.000000e+00 : f32
      %32 = vector.broadcast %cst_16 : f32 to vector<16x128xf32>
      %33 = arith.maximumf %31, %32 : vector<16x128xf32>
      %34 = arith.mulf %19, %19 : vector<16x128xf32>
      %35 = arith.mulf %29, %34 : vector<16x128xf32>
      %cst_17 = arith.constant 1.000000e+00 : f32
      %36 = vector.broadcast %cst_17 : f32 to vector<16x128xf32>
      %37 = arith.subf %36, %29 : vector<16x128xf32>
      %38 = arith.mulf %33, %33 : vector<16x128xf32>
      %39 = arith.mulf %37, %38 : vector<16x128xf32>
      %40 = tpu.iota {dimensions = array<i32: 0>} : vector<16x128xi32>
      %c16_i32_18 = arith.constant 16 : i32
      %41 = arith.muli %4, %c16_i32_18 : i32
      %42 = arith.addi %41, %17 : i32
      %43 = vector.broadcast %42 : i32 to vector<16x128xi32>
      %44 = arith.addi %43, %40 : vector<16x128xi32>
      %c16_i32_19 = arith.constant 16 : i32
      %45 = vector.broadcast %c16_i32_19 : i32 to vector<16x128xi32>
      %46 = arith.cmpi slt, %44, %45 : vector<16x128xi32>
      %cst_20 = arith.constant 0.000000e+00 : f32
      %47 = vector.broadcast %cst_20 : f32 to vector<16x128xf32>
      %48 = arith.select %46, %29, %47 : vector<16x128xi1>, vector<16x128xf32>
      %cst_21 = arith.constant 0.000000e+00 : f32
      %49 = vector.broadcast %cst_21 : f32 to vector<16x128xf32>
      %50 = arith.select %46, %35, %49 : vector<16x128xi1>, vector<16x128xf32>
      %cst_22 = arith.constant 0.000000e+00 : f32
      %51 = vector.broadcast %cst_22 : f32 to vector<16x128xf32>
      %52 = arith.select %46, %39, %51 : vector<16x128xi1>, vector<16x128xf32>
      %53 = vector.shape_cast %48 : vector<16x128xf32> to vector<2x8x128xf32>
      %cst_23 = arith.constant dense<0.000000e+00> : vector<8x128xf32>
      %54 = vector.multi_reduction <add>, %53, %cst_23 [0] : vector<2x8x128xf32> to vector<8x128xf32>
      %55 = vector.shape_cast %50 : vector<16x128xf32> to vector<2x8x128xf32>
      %cst_24 = arith.constant dense<0.000000e+00> : vector<8x128xf32>
      %56 = vector.multi_reduction <add>, %55, %cst_24 [0] : vector<2x8x128xf32> to vector<8x128xf32>
      %57 = vector.shape_cast %52 : vector<16x128xf32> to vector<2x8x128xf32>
      %cst_25 = arith.constant dense<0.000000e+00> : vector<8x128xf32>
      %58 = vector.multi_reduction <add>, %57, %cst_25 [0] : vector<2x8x128xf32> to vector<8x128xf32>
      %59 = tpu.concatenate %54, %56, %58 in 0 : vector<8x128xf32>, vector<8x128xf32>, vector<8x128xf32> -> vector<24x128xf32>
      %60 = arith.addf %15, %59 : vector<24x128xf32>
      %c1_i32_26 = arith.constant 1 : i32
      %61 = arith.addf %14, %60 : vector<24x128xf32>
      %c0_27 = arith.constant 0 : index
      %c0_28 = arith.constant 0 : index
      %c0_29 = arith.constant 0 : index
      %62 = vector.load %arg4[%c0_27, %c0_28, %c0_29] : memref<1x24x128xf32, #tpu.memory_space<vmem>>, vector<1x24x128xf32>
      %63 = vector.shape_cast %62 : vector<1x24x128xf32> to vector<24x128xf32>
      %64 = vector.shape_cast %61 : vector<24x128xf32> to vector<1x24x128xf32>
      tpu.vector_store %arg4[%c0_27, %c0_28, %c0_29], %64 {strides = array<i32>} : memref<1x24x128xf32, #tpu.memory_space<vmem>>, vector<1x24x128xf32>,
    } else {
    }
    return
  }
  func.func @transform_0(%arg0: i32, %arg1: i32) -> (i32, i32) {
    %c1_i32 = arith.constant 1 : i32
    %0 = arith.muli %arg0, %c1_i32 : i32
    %1 = arith.addi %0, %arg1 : i32
    %c0_i32 = arith.constant 0 : i32
    %2 = arith.minsi %1, %c0_i32 : i32
    %c0_i32_0 = arith.constant 0 : i32
    %c0_i32_1 = arith.constant 0 : i32
    return %2, %c0_i32_0 : i32, i32
  }
  func.func @transform_1(%arg0: i32, %arg1: i32) -> (i32, i32) {
    %c1_i32 = arith.constant 1 : i32
    %0 = arith.muli %arg0, %c1_i32 : i32
    %1 = arith.addi %0, %arg1 : i32
    %c0_i32 = arith.constant 0 : i32
    %2 = arith.minsi %1, %c0_i32 : i32
    %c0_i32_0 = arith.constant 0 : i32
    %c0_i32_1 = arith.constant 0 : i32
    return %2, %c0_i32_0 : i32, i32
  }
  func.func @transform_2(%arg0: i32, %arg1: i32) -> (i32, i32, i32) {
    %c0_i32 = arith.constant 0 : i32
    %c0_i32_0 = arith.constant 0 : i32
    %c0_i32_1 = arith.constant 0 : i32
    return %arg0, %c0_i32, %c0_i32_0 : i32, i32, i32
  }
}

</mosaic_0001>

<bundles_post_ra>
// kernel: tpu_custom_call.1
= control target key start
LH: loop header
LB: loop body
LE: loop exit
PB: predicated region body
PF: predicated region fallthrough
CT: control target
= control target key end

     0   :  { %7 = vsyncpa [#allocation3], 0  ;;  %s341_s0 = inlined_call_operand.hbm [shape: f32[16,128], index: 0, kind: input, shape index: {}]   ;;  %s342_s1 = inlined_call_operand.hbm [shape: f32[16,128], index: 1, kind: input, shape index: {}]   ;;  %s343_s2 = inlined_call_operand.hbm [shape: f32[1,24,128], index: 2, kind: output, shape index: {}]  }
   0x1   :  { %8 = vsyncpa [#allocation6], 0 }
   0x2   :  { %9 = vsyncpa [#allocation4], 0  ;;  %s276_s9 = smov [#allocation2]   ;;  %s204_s13 = scalar_lea.hbm %s341_s0, 256 }
   0x3   :  { %s21_s10 = sshll.u32 %s276_s9, 4  ;;  %p205_p0 = scmp.ne.s32.totalorder %s341_s0, %s204_s13  ;;  %s22_s10 = int_to_ptr.vmem [resolvable:$true] %s21_s10 }
   0x4   :  { %p208_p1 = scmp.lt.u32.totalorder %s204_s13, %s341_s0 }
   0x6   :  { %p210_p2 = pnand %p208_p1, %p205_p0 }
   0x8   :  { %213 = shalt.err (!%p210_p2)
}
   0x9   :  { %s214_s18 = scalar_lea.vmem %s22_s10, 256  ;;  %p219_p4 = scmp.lt.s32.totalorder %s22_s10, %s22_s10 }
   0xa   :  { %p215_p3 = scmp.ne.s32.totalorder %s22_s10, %s214_s18  ;;  %p220_p5 = scmp.lt.s32.totalorder %s214_s18, %s214_s18 }
   0xc   :  { %p221_p6 = por %p220_p5, %p219_p4 }
   0xe   :  { %p222_p7 = pnand %p221_p6, %p215_p3 }
  0x10   :  { %225 = shalt.err (!%p222_p7)
}
  0x11   :  { %s277_s19 = smov 128   ;;  %s278_s20 = smov 8  }
  0x12   :  { %27 = dma.hbm_to_vmem [thread:$0]  %s341_s0, 256, %s22_s10, [#allocation3], %s277_s19, %s277_s19, %s278_s20  }
  0x13   :  { %s279_s23 = smov [#allocation5]   ;;  %s226_s27 = scalar_lea.hbm %s342_s1, 256 }
  0x14   :  { %s39_s24 = sshll.u32 %s279_s23, 4  ;;  %p227_p8 = scmp.ne.s32.totalorder %s342_s1, %s226_s27  ;;  %s40_s24 = int_to_ptr.vmem [resolvable:$true] %s39_s24 }
  0x15   :  { %p230_p9 = scmp.lt.u32.totalorder %s226_s27, %s342_s1 }
  0x17   :  { %p232_p10 = pnand %p230_p9, %p227_p8 }
  0x19   :  { %235 = shalt.err (!%p232_p10)
}
  0x1a   :  { %s236_s4 = scalar_lea.vmem %s40_s24, 256  ;;  %p241_p12 = scmp.lt.s32.totalorder %s40_s24, %s40_s24 }
  0x1b   :  { %p237_p11 = scmp.ne.s32.totalorder %s40_s24, %s236_s4  ;;  %p242_p13 = scmp.lt.s32.totalorder %s236_s4, %s236_s4 }
  0x1d   :  { %p243_p0 = por %p242_p13, %p241_p12 }
  0x1f   :  { %p244_p1 = pnand %p243_p0, %p237_p11 }
  0x21   :  { %247 = shalt.err (!%p244_p1)
}
  0x22   :  { %45 = dma.hbm_to_vmem [thread:$0]  %s342_s1, 256, %s40_s24, [#allocation6], %s277_s19, %s277_s19, %s278_s20  }
  0x23   :  { %270 = dma.done.wait [#allocation3], 256  }
  0x24   :  { %271 = vsyncadd [#allocation3], 4294967040 }
  0x25   :  { %272 = dma.done.wait [#allocation6], 256  }
  0x26   :  { %273 = vsyncadd [#allocation6], 4294967040  ;;  %v79_v0 = vld [vmem:[#allocation5] sm:$0xff]  ;;  %v80_v1 = vld [vmem:[#allocation5 + $0x8] sm:$0xff]  ;;  %s280_s1 = smov [#allocation7]  }
  0x27   :  { %v77_v2 = vld [vmem:[#allocation2] sm:$0xff]  ;;  %vm81_vm0 = vcmp.eq.f32.partialorder %v79_v0, 255.0  ;;  %vm82_vm1 = vcmp.eq.f32.partialorder %v80_v1, 255.0  ;;  %v78_v3 = vld [vmem:[#allocation2 + $0x8] sm:$0xff]  ;;  %s181_s6 = sshll.u32 %s280_s1, 4  ;;  %s182_s6 = int_to_ptr.vmem [resolvable:$true] %s181_s6 }
  0x28   :  { %v89_v4 = vsub.f32 2.0, %v77_v2  ;;  %v83_v5 = vsel %vm81_vm0, 1.0, %v79_v0  ;;  %v84_v6 = vsel %vm82_vm1, 1.0, %v80_v1  ;;  %v93_v7 = vmul.f32 %v77_v2, %v77_v2  ;;  %s248_s7 = scalar_lea.vmem %s182_s6, 384  ;;  %p253_p3 = scmp.lt.s32.totalorder %s182_s6, %s182_s6 }
  0x29   :  { %v90_v8 = vsub.f32 2.0, %v78_v3  ;;  %v85_v9 = vadd.f32 1.0, %v83_v5  ;;  %v86_v10 = vadd.f32 1.0, %v84_v6  ;;  %v94_v11 = vmul.f32 %v78_v3, %v78_v3  ;;  %p249_p2 = scmp.ne.s32.totalorder %s182_s6, %s248_s7  ;;  %p254_p4 = scmp.lt.s32.totalorder %s248_s7, %s248_s7 }
  0x2a   :  { %v91_v12 = vmax.f32 %v89_v4, 0.0 }
  0x2b   :  { %v92_v13 = vmax.f32 %v90_v8, 0.0  ;;  %v87_v14 = vmul.f32 0.5, %v85_v9  ;;  %v88_v15 = vmul.f32 0.5, %v86_v10  ;;  %p255_p5 = por %p254_p4, %p253_p3 }
  0x2c   :  { %v99_v16 = vmul.f32 %v91_v12, %v91_v12 }
  0x2d   :  { %v100_v17 = vmul.f32 %v92_v13, %v92_v13  ;;  %v103_v18 = vadd.f32 %v88_v15, %v87_v14  ;;  %v95_v19 = vmul.f32 %v93_v7, %v87_v14  ;;  %v96_v20 = vmul.f32 %v94_v11, %v88_v15  ;;  %p256_p6 = pnand %p255_p5, %p249_p2 }
  0x2e   :  { %v97_v21 = vsub.f32 1.0, %v87_v14  ;;  %v98_v22 = vsub.f32 1.0, %v88_v15 }
  0x2f   :  { %v104_v23 = vadd.f32 %v96_v20, %v95_v19  ;;  %112 = vst [vmem:[#allocation7] sm:$0xff] %v103_v18 }
  0x30   :  { %v101_v24 = vmul.f32 %v99_v16, %v97_v21  ;;  %v102_v25 = vmul.f32 %v100_v17, %v98_v22 }
  0x31   :  { %113 = vst [vmem:[#allocation7 + $0x8] sm:$0xff] %v104_v23 }
  0x32   :  { %v105_v26 = vadd.f32 %v102_v25, %v101_v24 }
  0x34   :  { %114 = vst [vmem:[#allocation7 + $0x10] sm:$0xff] %v105_v26 }
  0x35   :  { %259 = shalt.err (!%p256_p6)
}
  0x36   :  { %s260_s10 = scalar_lea.hbm %s343_s2, 384 }
  0x37   :  { %p261_p7 = scmp.ne.s32.totalorder %s343_s2, %s260_s10  ;;  %p264_p8 = scmp.lt.u32.totalorder %s260_s10, %s343_s2 }
  0x39   :  { %p266_p9 = pnand %p264_p8, %p261_p7 }
  0x3b   :  { %269 = shalt.err (!%p266_p9)
}
  0x3c   :  { %187 = dma.vmem_to_hbm [thread:$0]  %s182_s6, 384, %s343_s2, [#allocation4], %s277_s19, %s277_s19, %s278_s20  }
  0x3d   :  { %274 = dma.done.wait [#allocation4], 384  }
  0x3e   :  { %275 = vsyncadd [#allocation4], 4294966912 }
  0x3f   :  { %191 = vsyncpa [#allocation3], 1 }
  0x40   :  { %192 = vsyncpa [#allocation6], 1 }
  0x41   :  { %193 = vsyncpa [#allocation4], 1 }

</bundles_post_ra>
